<compile_context>
chip_gen: v6e
topology: v6e:2x2x1
jax: 0.10.0
libtpu: 0.0.40
codegen_flags: <defaults>
</compile_context>

<pallas_src>
import math
from functools import partial

import jax
import jax.numpy as jnp
import numpy as np
from jax import lax
from jax.experimental import pallas as pl
from jax.experimental.pallas import tpu as pltpu


# ----------------------------------------------------------------------------
# Glue: sinusoidal positional embedding table (SinusoidalPositionalEmbedding).
# ----------------------------------------------------------------------------
def sinusoidal_embedding(num_embeddings: int, embedding_dim: int) -> jnp.ndarray:
    half_dim = embedding_dim // 2
    scale = math.log(10000.0) / (half_dim - 1)
    inv_freq = jnp.exp(jnp.arange(half_dim, dtype=jnp.float32) * -scale)
    ang = jnp.arange(num_embeddings, dtype=jnp.float32)[:, None] * inv_freq[None, :]
    emb = jnp.concatenate([jnp.sin(ang), jnp.cos(ang)], axis=1)
    if embedding_dim % 2 == 1:
        emb = jnp.concatenate(
            [emb, jnp.zeros((num_embeddings, 1), jnp.float32)], axis=1
        )
    return emb  # (num_embeddings, embedding_dim)


# ----------------------------------------------------------------------------
# Kernel A: batch-invariant softmax probabilities (runs once).
#   outputs:  p      (H, T, T)  per-head attention probabilities
#             attnw  (T, T)     head-averaged weights (emitted exactly once)
# ----------------------------------------------------------------------------
def pos_softmax_kernel(
    pos_ref,            # (T, E)
    wq_ref, bq_ref,     # (E, E), (1, E)
    wk_ref, bk_ref,     # (E, E), (1, E)
    p_ref,              # (H, T, T) out
    attnw_ref,          # (T, T)    out
    *,
    num_heads: int,
    head_dim: int,
):
    scaling = head_dim ** -0.5
    pos = pos_ref[...]                                            # (T, E)
    q = (jnp.dot(pos, wq_ref[...], preferred_element_type=jnp.float32)
         + bq_ref[...]) * scaling                                 # (T, E)
    k = jnp.dot(pos, wk_ref[...], preferred_element_type=jnp.float32) + bk_ref[...]

    T = pos.shape[0]
    attn_sum = jnp.zeros((T, T), jnp.float32)
    for h in range(num_heads):                                    # static unroll
        lo = h * head_dim
        qh = q[:, lo:lo + head_dim]                               # (T, Dh)
        kh = k[:, lo:lo + head_dim]                               # (T, Dh)
        # contract the last dims directly (no explicit kh.T materialization)
        s = lax.dot_general(qh, kh, (((1,), (1,)), ((), ())),
                            preferred_element_type=jnp.float32)   # (T, T)
        s = s - jnp.max(s, axis=-1, keepdims=True)
        e = jnp.exp(s)
        denom = jnp.sum(e, axis=-1, keepdims=True)                # (T, 1)
        # reciprocal on the row-sums (exact mode keeps parity with the
        # reference; approx=True would push it onto the EUP but this runs
        # only once per forward now anyway).
        p_h = e * pl.reciprocal(denom, approx=False)
        p_ref[h] = p_h
        attn_sum = attn_sum + p_h
    attnw_ref[...] = attn_sum * (1.0 / num_heads)


# ----------------------------------------------------------------------------
# Kernel B: per batch-block value projection + attention application.
#   p is fed with a constant index_map so it stays resident in VMEM.
# ----------------------------------------------------------------------------
def attn_apply_kernel(
    p_ref,              # (H, T, T)  resident
    x_ref,              # (BB, T, E) value source for this batch block
    wv_ref, bv_ref,     # (E, E), (1, E)
    wo_ref, bo_ref,     # (E, E), (1, E)
    out_ref,            # (BB, T, E) out
    ctx_ref,            # (BB*T, E)  VMEM scratch
    *,
    num_heads: int,
    head_dim: int,
):
    BB, T, E = x_ref.shape

    # One big value projection over the whole batch block (M = BB*T rows).
    x2 = x_ref[...].reshape(BB * T, E)
    v = jnp.dot(x2, wv_ref[...], preferred_element_type=jnp.float32) + bv_ref[...]

    # Apply the precomputed per-head probabilities.  Results are written
    # directly into the ctx scratch slab (no lane-axis concatenate).
    for h in range(num_heads):                                    # static unroll
        lo = h * head_dim
        p_h = p_ref[h]                                            # (T, T)
        vh = v[:, lo:lo + head_dim]                               # (BB*T, Dh)
        for b in range(BB):                                       # static unroll
            ctx_ref[b * T:(b + 1) * T, lo:lo + head_dim] = jnp.dot(
                p_h, vh[b * T:(b + 1) * T, :],
                preferred_element_type=jnp.float32)

    # One big output projection (M = BB*T rows again).
    out2 = jnp.dot(ctx_ref[...], wo_ref[...],
                   preferred_element_type=jnp.float32) + bo_ref[...]
    out_ref[...] = out2.reshape(BB, T, E)


# ----------------------------------------------------------------------------
# Wrapper: builds positional encodings, runs the two pallas_calls.
# ----------------------------------------------------------------------------
def positional_attention(x_tbe, params, pos_table, num_heads, block_b=8):
    T, B, E = x_tbe.shape
    head_dim = E // num_heads

    # positions = cumsum(ones) + padding_idx(0)  ->  1 .. T  (batch-invariant)
    pos = pos_table[1:T + 1]                                      # (T, E)

    kA = partial(pos_softmax_kernel, num_heads=num_heads, head_dim=head_dim)
    full2d = lambda i: (0, 0)
    full3d = lambda i: (0, 0, 0)

    # --- Kernel A: batch-invariant probabilities (single grid step) ---------
    p, attnw = pl.pallas_call(
        kA,
        grid=(1,),
        in_specs=[
            pl.BlockSpec((T, E), full2d),               # pos
            pl.BlockSpec((E, E), full2d),               # Wq
            pl.BlockSpec((1, E), full2d),               # bq
            pl.BlockSpec((E, E), full2d),               # Wk
            pl.BlockSpec((1, E), full2d),               # bk
        ],
        out_specs=[
            pl.BlockSpec((num_heads, T, T), full3d),    # p
            pl.BlockSpec((T, T), full2d),               # attnw (once)
        ],
        out_shape=[
            jax.ShapeDtypeStruct((num_heads, T, T), jnp.float32),
            jax.ShapeDtypeStruct((T, T), jnp.float32),
        ],
    )(pos, params["wq"], params["bq"], params["wk"], params["bk"])

    # --- Kernel B: grid over batch blocks -----------------------------------
    BB = min(block_b, B)
    B_pad = ((B + BB - 1) // BB) * BB
    x_bte = jnp.transpose(x_tbe, (1, 0, 2))                       # (B, T, E)
    if B_pad != B:
        x_bte = jnp.pad(x_bte, ((0, B_pad - B), (0, 0), (0, 0)))

    kB = partial(attn_apply_kernel, num_heads=num_heads, head_dim=head_dim)
    # NOTE: VMEM budget (per step) = weights (2*E*E*4B) + p (H*T*T*4B)
    # + double-buffered (BB,T,E) in/out blocks + (BB*T,E) scratch.  For the
    # demo shapes this is a few KiB; re-derive BB against 64 MiB on v7x.
    out_bte = pl.pallas_call(
        kB,
        grid=(B_pad // BB,),
        in_specs=[
            pl.BlockSpec((num_heads, T, T), lambda i: (0, 0, 0)),  # p (resident)
            pl.BlockSpec((BB, T, E), lambda i: (i, 0, 0)),         # x block
            pl.BlockSpec((E, E), full2d),                          # Wv
            pl.BlockSpec((1, E), full2d),                          # bv
            pl.BlockSpec((E, E), full2d),                          # Wo
            pl.BlockSpec((1, E), full2d),                          # bo
        ],
        out_specs=pl.BlockSpec((BB, T, E), lambda i: (i, 0, 0)),
        out_shape=jax.ShapeDtypeStruct((B_pad, T, E), jnp.float32),
        scratch_shapes=[pltpu.VMEM((BB * T, E), jnp.float32)],
        compiler_params=pltpu.CompilerParams(
            dimension_semantics=("parallel",)),
    )(p, x_bte, params["wv"], params["bv"], params["wo"], params["bo"])

    out_bte = out_bte[:B]
    attn = jnp.transpose(out_bte, (1, 0, 2))                      # (T, B, E)
    attn_weights = jnp.broadcast_to(attnw[None], (B, T, T))       # (B, T, T)
    return attn, attn_weights


# ----------------------------------------------------------------------------
# Pure-JAX reference for correctness checking.
# ----------------------------------------------------------------------------
def reference(x_tbe, params, pos_table, num_heads):
    T, B, E = x_tbe.shape
    Dh = E // num_heads
    pos = pos_table[1:T + 1]                                      # (T, E)
    q = (pos @ params["wq"] + params["bq"][0]) * (Dh ** -0.5)
    k = pos @ params["wk"] + params["bk"][0]
    v = jnp.einsum("tbe,ef->tbf", x_tbe, params["wv"]) + params["bv"][0]
    qh = q.reshape(T, num_heads, Dh)
    kh = k.reshape(T, num_heads, Dh)
    vh = v.reshape(T, B, num_heads, Dh)
    s = jnp.einsum("qhd,khd->hqk", qh, kh)
    p = jax.nn.softmax(s, axis=-1)
    ctx = jnp.einsum("hqk,kbhd->qbhd", p, vh).reshape(T, B, E)
    out = ctx @ params["wo"] + params["bo"][0]
    attnw = jnp.broadcast_to(jnp.mean(p, axis=0)[None], (B, T, T))
    return out, attnw


# ----------------------------------------------------------------------------
# Deterministic parameter init + demo run.
# ----------------------------------------------------------------------------
def init_params(key, embed_dim):
    keys = jax.random.split(key, 8)
    bound = 1.0 / math.sqrt(embed_dim)
    uni = lambda k, shape: jax.random.uniform(
        k, shape, jnp.float32, minval=-bound, maxval=bound
    )
    return {
        "wq": uni(keys[0], (embed_dim, embed_dim)),
        "bq": uni(keys[1], (1, embed_dim)),
        "wk": uni(keys[2], (embed_dim, embed_dim)),
        "bk": uni(keys[3], (1, embed_dim)),
        "wv": uni(keys[4], (embed_dim, embed_dim)),
        "bv": uni(keys[5], (1, embed_dim)),
        "wo": uni(keys[6], (embed_dim, embed_dim)),
        "bo": uni(keys[7], (1, embed_dim)),
    }


if __name__ == "__main__":
    T, B, E, H = 8, 2, 32, 4
    MAX_SEQ = 128

    key = jax.random.PRNGKey(0)
    k_x, k_p = jax.random.split(key)
    x = jax.random.normal(k_x, (T, B, E), dtype=jnp.float32)   # Time x Batch x Embed
    params = init_params(k_p, E)
    pos_table = sinusoidal_embedding(MAX_SEQ + 1, E)            # (129, E)

    attn, attn_weights = positional_attention(x, params, pos_table, H)
    attn = jax.block_until_ready(attn)
    attn_weights = jax.block_until_ready(attn_weights)

    ref_attn, ref_w = reference(x, params, pos_table, H)
    np.testing.assert_allclose(np.asarray(attn), np.asarray(ref_attn),
                               rtol=1e-5, atol=1e-5)
    np.testing.assert_allclose(np.asarray(attn_weights), np.asarray(ref_w),
                               rtol=1e-5, atol=1e-5)
    assert attn.shape == (T, B, E) and attn_weights.shape == (B, T, T)

    print("KERNEL_OK")
</pallas_src>

<mosaic_0001>
module attributes {stable_mosaic.version = 11 : i64} {
  func.func @pos_softmax_kernel(%arg0: i32, %arg1: memref<8x32xf32, #tpu.memory_space<vmem>>, %arg2: memref<32x32xf32, #tpu.memory_space<vmem>>, %arg3: memref<1x32xf32, #tpu.memory_space<vmem>>, %arg4: memref<32x32xf32, #tpu.memory_space<vmem>>, %arg5: memref<1x32xf32, #tpu.memory_space<vmem>>, %arg6: memref<4x8x8xf32, #tpu.memory_space<vmem>>, %arg7: memref<8x8xf32, #tpu.memory_space<vmem>>) attributes {dimension_semantics = [#tpu.dimension_semantics<arbitrary>], iteration_bounds = array<i64: 1>, scalar_prefetch = 0 : i64, scratch_operands = 0 : i64, tpu.core_type = #tpu.core_type<tc>, window_params = [{pipeline_mode = #tpu.pipeline_mode<synchronous>, transform_indices = @transform_0, window_bounds = array<i64: 8, 32>}, {pipeline_mode = #tpu.pipeline_mode<synchronous>, transform_indices = @transform_1, window_bounds = array<i64: 32, 32>}, {pipeline_mode = #tpu.pipeline_mode<synchronous>, transform_indices = @transform_2, window_bounds = array<i64: 1, 32>}, {pipeline_mode = #tpu.pipeline_mode<synchronous>, transform_indices = @transform_3, window_bounds = array<i64: 32, 32>}, {pipeline_mode = #tpu.pipeline_mode<synchronous>, transform_indices = @transform_4, window_bounds = array<i64: 1, 32>}, {pipeline_mode = #tpu.pipeline_mode<synchronous>, transform_indices = @transform_5, window_bounds = array<i64: 4, 8, 8>}, {pipeline_mode = #tpu.pipeline_mode<synchronous>, transform_indices = @transform_6, window_bounds = array<i64: 8, 8>}]} {
    %c0 = arith.constant 0 : index
    %c0_0 = arith.constant 0 : index
    %0 = vector.load %arg1[%c0, %c0_0] : memref<8x32xf32, #tpu.memory_space<vmem>>, vector<8x32xf32>
    %c0_1 = arith.constant 0 : index
    %c0_2 = arith.constant 0 : index
    %1 = vector.load %arg2[%c0_1, %c0_2] : memref<32x32xf32, #tpu.memory_space<vmem>>, vector<32x32xf32>
    %cst = arith.constant dense<0.000000e+00> : vector<8x32xf32>
    %2 = tpu.matmul %0, %1, %cst {dimension_numbers = #tpu.dot_dimension_numbers<[1], [0], [0], [1], [0, 0, 1, 1], [], []>} : vector<8x32xf32>, vector<32x32xf32>, vector<8x32xf32> -> vector<8x32xf32>
    %c0_3 = arith.constant 0 : index
    %c0_4 = arith.constant 0 : index
    %3 = vector.load %arg3[%c0_3, %c0_4] : memref<1x32xf32, #tpu.memory_space<vmem>>, vector<1x32xf32>
    %4 = vector.broadcast %3 : vector<1x32xf32> to vector<8x32xf32>
    %5 = arith.addf %2, %4 : vector<8x32xf32>
    %cst_5 = arith.constant 0.353553385 : f32
    %6 = vector.broadcast %cst_5 : f32 to vector<8x32xf32>
    %7 = arith.mulf %5, %6 : vector<8x32xf32>
    %c0_6 = arith.constant 0 : index
    %c0_7 = arith.constant 0 : index
    %8 = vector.load %arg4[%c0_6, %c0_7] : memref<32x32xf32, #tpu.memory_space<vmem>>, vector<32x32xf32>
    %cst_8 = arith.constant dense<0.000000e+00> : vector<8x32xf32>
    %9 = tpu.matmul %0, %8, %cst_8 {dimension_numbers = #tpu.dot_dimension_numbers<[1], [0], [0], [1], [0, 0, 1, 1], [], []>} : vector<8x32xf32>, vector<32x32xf32>, vector<8x32xf32> -> vector<8x32xf32>
    %c0_9 = arith.constant 0 : index
    %c0_10 = arith.constant 0 : index
    %10 = vector.load %arg5[%c0_9, %c0_10] : memref<1x32xf32, #tpu.memory_space<vmem>>, vector<1x32xf32>
    %11 = vector.broadcast %10 : vector<1x32xf32> to vector<8x32xf32>
    %12 = arith.addf %9, %11 : vector<8x32xf32>
    %cst_11 = arith.constant 0.000000e+00 : f32
    %13 = vector.broadcast %cst_11 : f32 to vector<8x8xf32>
    %14 = vector.extract_strided_slice %7 {offsets = [0, 0], sizes = [8, 8], strides = [1, 1]} : vector<8x32xf32> to vector<8x8xf32>
    %15 = vector.extract_strided_slice %12 {offsets = [0, 0], sizes = [8, 8], strides = [1, 1]} : vector<8x32xf32> to vector<8x8xf32>
    %cst_12 = arith.constant dense<0.000000e+00> : vector<8x8xf32>
    %16 = tpu.matmul %14, %15, %cst_12 {dimension_numbers = #tpu.dot_dimension_numbers<[1], [1], [0], [0], [0, 0, 1, 0], [], []>} : vector<8x8xf32>, vector<8x8xf32>, vector<8x8xf32> -> vector<8x8xf32>
    %cst_13 = arith.constant dense<0xFF800000> : vector<8xf32>
    %17 = vector.multi_reduction <maximumf>, %16, %cst_13 [1] : vector<8x8xf32> to vector<8xf32>
    %18 = vector.shape_cast %17 : vector<8xf32> to vector<8x1xf32>
    %19 = vector.broadcast %18 : vector<8x1xf32> to vector<8x8xf32>
    %20 = arith.subf %16, %19 : vector<8x8xf32>
    %21 = math.exp %20 : vector<8x8xf32>
    %cst_14 = arith.constant dense<0.000000e+00> : vector<8xf32>
    %22 = vector.multi_reduction <add>, %21, %cst_14 [1] : vector<8x8xf32> to vector<8xf32>
    %23 = vector.shape_cast %22 : vector<8xf32> to vector<8x1xf32>
    %24 = tpu.reciprocal %23 : vector<8x1xf32> -> vector<8x1xf32>
    %25 = vector.broadcast %24 : vector<8x1xf32> to vector<8x8xf32>
    %26 = arith.mulf %21, %25 : vector<8x8xf32>
    %c0_15 = arith.constant 0 : index
    %c0_16 = arith.constant 0 : index
    %c0_17 = arith.constant 0 : index
    %27 = vector.load %arg6[%c0_15, %c0_16, %c0_17] : memref<4x8x8xf32, #tpu.memory_space<vmem>>, vector<1x8x8xf32>
    %28 = vector.shape_cast %27 : vector<1x8x8xf32> to vector<8x8xf32>
    %29 = vector.shape_cast %26 : vector<8x8xf32> to vector<1x8x8xf32>
    tpu.vector_store %arg6[%c0_15, %c0_16, %c0_17], %29 {strides = array<i32>} : memref<4x8x8xf32, #tpu.memory_space<vmem>>, vector<1x8x8xf32>,
    %30 = arith.addf %13, %26 : vector<8x8xf32>
    %31 = vector.extract_strided_slice %7 {offsets = [0, 8], sizes = [8, 8], strides = [1, 1]} : vector<8x32xf32> to vector<8x8xf32>
    %32 = vector.extract_strided_slice %12 {offsets = [0, 8], sizes = [8, 8], strides = [1, 1]} : vector<8x32xf32> to vector<8x8xf32>
    %cst_18 = arith.constant dense<0.000000e+00> : vector<8x8xf32>
    %33 = tpu.matmul %31, %32, %cst_18 {dimension_numbers = #tpu.dot_dimension_numbers<[1], [1], [0], [0], [0, 0, 1, 0], [], []>} : vector<8x8xf32>, vector<8x8xf32>, vector<8x8xf32> -> vector<8x8xf32>
    %cst_19 = arith.constant dense<0xFF800000> : vector<8xf32>
    %34 = vector.multi_reduction <maximumf>, %33, %cst_19 [1] : vector<8x8xf32> to vector<8xf32>
    %35 = vector.shape_cast %34 : vector<8xf32> to vector<8x1xf32>
    %36 = vector.broadcast %35 : vector<8x1xf32> to vector<8x8xf32>
    %37 = arith.subf %33, %36 : vector<8x8xf32>
    %38 = math.exp %37 : vector<8x8xf32>
    %cst_20 = arith.constant dense<0.000000e+00> : vector<8xf32>
    %39 = vector.multi_reduction <add>, %38, %cst_20 [1] : vector<8x8xf32> to vector<8xf32>
    %40 = vector.shape_cast %39 : vector<8xf32> to vector<8x1xf32>
    %41 = tpu.reciprocal %40 : vector<8x1xf32> -> vector<8x1xf32>
    %42 = vector.broadcast %41 : vector<8x1xf32> to vector<8x8xf32>
    %43 = arith.mulf %38, %42 : vector<8x8xf32>
    %c1 = arith.constant 1 : index
    %c0_21 = arith.constant 0 : index
    %c0_22 = arith.constant 0 : index
    %44 = vector.load %arg6[%c1, %c0_21, %c0_22] : memref<4x8x8xf32, #tpu.memory_space<vmem>>, vector<1x8x8xf32>
    %45 = vector.shape_cast %44 : vector<1x8x8xf32> to vector<8x8xf32>
    %46 = vector.shape_cast %43 : vector<8x8xf32> to vector<1x8x8xf32>
    tpu.vector_store %arg6[%c1, %c0_21, %c0_22], %46 {strides = array<i32>} : memref<4x8x8xf32, #tpu.memory_space<vmem>>, vector<1x8x8xf32>,
    %47 = arith.addf %30, %43 : vector<8x8xf32>
    %48 = vector.extract_strided_slice %7 {offsets = [0, 16], sizes = [8, 8], strides = [1, 1]} : vector<8x32xf32> to vector<8x8xf32>
    %49 = vector.extract_strided_slice %12 {offsets = [0, 16], sizes = [8, 8], strides = [1, 1]} : vector<8x32xf32> to vector<8x8xf32>
    %cst_23 = arith.constant dense<0.000000e+00> : vector<8x8xf32>
    %50 = tpu.matmul %48, %49, %cst_23 {dimension_numbers = #tpu.dot_dimension_numbers<[1], [1], [0], [0], [0, 0, 1, 0], [], []>} : vector<8x8xf32>, vector<8x8xf32>, vector<8x8xf32> -> vector<8x8xf32>
    %cst_24 = arith.constant dense<0xFF800000> : vector<8xf32>
    %51 = vector.multi_reduction <maximumf>, %50, %cst_24 [1] : vector<8x8xf32> to vector<8xf32>
    %52 = vector.shape_cast %51 : vector<8xf32> to vector<8x1xf32>
    %53 = vector.broadcast %52 : vector<8x1xf32> to vector<8x8xf32>
    %54 = arith.subf %50, %53 : vector<8x8xf32>
    %55 = math.exp %54 : vector<8x8xf32>
    %cst_25 = arith.constant dense<0.000000e+00> : vector<8xf32>
    %56 = vector.multi_reduction <add>, %55, %cst_25 [1] : vector<8x8xf32> to vector<8xf32>
    %57 = vector.shape_cast %56 : vector<8xf32> to vector<8x1xf32>
    %58 = tpu.reciprocal %57 : vector<8x1xf32> -> vector<8x1xf32>
    %59 = vector.broadcast %58 : vector<8x1xf32> to vector<8x8xf32>
    %60 = arith.mulf %55, %59 : vector<8x8xf32>
    %c2 = arith.constant 2 : index
    %c0_26 = arith.constant 0 : index
    %c0_27 = arith.constant 0 : index
    %61 = vector.load %arg6[%c2, %c0_26, %c0_27] : memref<4x8x8xf32, #tpu.memory_space<vmem>>, vector<1x8x8xf32>
    %62 = vector.shape_cast %61 : vector<1x8x8xf32> to vector<8x8xf32>
    %63 = vector.shape_cast %60 : vector<8x8xf32> to vector<1x8x8xf32>
    tpu.vector_store %arg6[%c2, %c0_26, %c0_27], %63 {strides = array<i32>} : memref<4x8x8xf32, #tpu.memory_space<vmem>>, vector<1x8x8xf32>,
    %64 = arith.addf %47, %60 : vector<8x8xf32>
    %65 = vector.extract_strided_slice %7 {offsets = [0, 24], sizes = [8, 8], strides = [1, 1]} : vector<8x32xf32> to vector<8x8xf32>
    %66 = vector.extract_strided_slice %12 {offsets = [0, 24], sizes = [8, 8], strides = [1, 1]} : vector<8x32xf32> to vector<8x8xf32>
    %cst_28 = arith.constant dense<0.000000e+00> : vector<8x8xf32>
    %67 = tpu.matmul %65, %66, %cst_28 {dimension_numbers = #tpu.dot_dimension_numbers<[1], [1], [0], [0], [0, 0, 1, 0], [], []>} : vector<8x8xf32>, vector<8x8xf32>, vector<8x8xf32> -> vector<8x8xf32>
    %cst_29 = arith.constant dense<0xFF800000> : vector<8xf32>
    %68 = vector.multi_reduction <maximumf>, %67, %cst_29 [1] : vector<8x8xf32> to vector<8xf32>
    %69 = vector.shape_cast %68 : vector<8xf32> to vector<8x1xf32>
    %70 = vector.broadcast %69 : vector<8x1xf32> to vector<8x8xf32>
    %71 = arith.subf %67, %70 : vector<8x8xf32>
    %72 = math.exp %71 : vector<8x8xf32>
    %cst_30 = arith.constant dense<0.000000e+00> : vector<8xf32>
    %73 = vector.multi_reduction <add>, %72, %cst_30 [1] : vector<8x8xf32> to vector<8xf32>
    %74 = vector.shape_cast %73 : vector<8xf32> to vector<8x1xf32>
    %75 = tpu.reciprocal %74 : vector<8x1xf32> -> vector<8x1xf32>
    %76 = vector.broadcast %75 : vector<8x1xf32> to vector<8x8xf32>
    %77 = arith.mulf %72, %76 : vector<8x8xf32>
    %c3 = arith.constant 3 : index
    %c0_31 = arith.constant 0 : index
    %c0_32 = arith.constant 0 : index
    %78 = vector.load %arg6[%c3, %c0_31, %c0_32] : memref<4x8x8xf32, #tpu.memory_space<vmem>>, vector<1x8x8xf32>
    %79 = vector.shape_cast %78 : vector<1x8x8xf32> to vector<8x8xf32>
    %80 = vector.shape_cast %77 : vector<8x8xf32> to vector<1x8x8xf32>
    tpu.vector_store %arg6[%c3, %c0_31, %c0_32], %80 {strides = array<i32>} : memref<4x8x8xf32, #tpu.memory_space<vmem>>, vector<1x8x8xf32>,
    %81 = arith.addf %64, %77 : vector<8x8xf32>
    %cst_33 = arith.constant 2.500000e-01 : f32
    %82 = vector.broadcast %cst_33 : f32 to vector<8x8xf32>
    %83 = arith.mulf %81, %82 : vector<8x8xf32>
    %c0_34 = arith.constant 0 : index
    %c0_35 = arith.constant 0 : index
    %84 = vector.load %arg7[%c0_34, %c0_35] : memref<8x8xf32, #tpu.memory_space<vmem>>, vector<8x8xf32>
    tpu.vector_store %arg7[%c0_34, %c0_35], %83 {strides = array<i32>} : memref<8x8xf32, #tpu.memory_space<vmem>>, vector<8x8xf32>,
    return
  }
  func.func @transform_0(%arg0: i32) -> (i32, i32) {
    %c0_i32 = arith.constant 0 : i32
    %c0_i32_0 = arith.constant 0 : i32
    %c0_i32_1 = arith.constant 0 : i32
    return %c0_i32, %c0_i32_0 : i32, i32
  }
  func.func @transform_1(%arg0: i32) -> (i32, i32) {
    %c0_i32 = arith.constant 0 : i32
    %c0_i32_0 = arith.constant 0 : i32
    %c0_i32_1 = arith.constant 0 : i32
    return %c0_i32, %c0_i32_0 : i32, i32
  }
  func.func @transform_2(%arg0: i32) -> (i32, i32) {
    %c0_i32 = arith.constant 0 : i32
    %c0_i32_0 = arith.constant 0 : i32
    %c0_i32_1 = arith.constant 0 : i32
    return %c0_i32, %c0_i32_0 : i32, i32
  }
  func.func @transform_3(%arg0: i32) -> (i32, i32) {
    %c0_i32 = arith.constant 0 : i32
    %c0_i32_0 = arith.constant 0 : i32
    %c0_i32_1 = arith.constant 0 : i32
    return %c0_i32, %c0_i32_0 : i32, i32
  }
  func.func @transform_4(%arg0: i32) -> (i32, i32) {
    %c0_i32 = arith.constant 0 : i32
    %c0_i32_0 = arith.constant 0 : i32
    %c0_i32_1 = arith.constant 0 : i32
    return %c0_i32, %c0_i32_0 : i32, i32
  }
  func.func @transform_5(%arg0: i32) -> (i32, i32, i32) {
    %c0_i32 = arith.constant 0 : i32
    %c0_i32_0 = arith.constant 0 : i32
    %c0_i32_1 = arith.constant 0 : i32
    %c0_i32_2 = arith.constant 0 : i32
    return %c0_i32, %c0_i32_0, %c0_i32_1 : i32, i32, i32
  }
  func.func @transform_6(%arg0: i32) -> (i32, i32) {
    %c0_i32 = arith.constant 0 : i32
    %c0_i32_0 = arith.constant 0 : i32
    %c0_i32_1 = arith.constant 0 : i32
    return %c0_i32, %c0_i32_0 : i32, i32
  }
}

</mosaic_0001>

<bundles_post_ra>
// kernel: tpu_custom_call.1
= control target key start
LH: loop header
LB: loop body
LE: loop exit
PB: predicated region body
PF: predicated region fallthrough
CT: control target
= control target key end

     0   :  { %12 = vsyncpa [#allocation3], 0  ;;  %s961_s0 = inlined_call_operand.hbm [shape: f32[8,32], index: 0, kind: input, shape index: {}]   ;;  %s962_s1 = inlined_call_operand.hbm [shape: f32[32,32], index: 1, kind: input, shape index: {}]   ;;  %s963_s2 = inlined_call_operand.vmem [shape: f32[1,32], index: 2, kind: input, shape index: {}]   ;;  %s964_s3 = inlined_call_operand.hbm [shape: f32[32,32], index: 3, kind: input, shape index: {}]   ;;  %s965_s4 = inlined_call_operand.vmem [shape: f32[1,32], index: 4, kind: input, shape index: {}]   ;;  %s966_s5 = inlined_call_operand.hbm [shape: f32[4,8,8], index: 5, kind: output, shape index: {0}]   ;;  %s967_s6 = inlined_call_operand.hbm [shape: f32[8,8], index: 6, kind: output, shape index: {1}]  }
   0x1   :  { %13 = vsyncpa [#allocation6], 0 }
   0x2   :  { %14 = vsyncpa [#allocation4], 0 }
   0x3   :  { %15 = vsyncpa [#allocation10], 0  ;;  %s839_s21 = smov [#allocation5]  }
   0x4   :  { %s31_s22 = sshll.u32 %s839_s21, 4  ;;  %s32_s22 = int_to_ptr.vmem [resolvable:$true] %s31_s22 }
   0x5   :  { %s739_s23 = scalar_lea.vmem %s32_s22, 512  ;;  %p744_p1 = scmp.lt.s32.totalorder %s32_s22, %s32_s22 }
   0x6   :  { %p740_p0 = scmp.ne.s32.totalorder %s32_s22, %s739_s23  ;;  %p745_p2 = scmp.lt.s32.totalorder %s739_s23, %s739_s23 }
   0x8   :  { %p746_p3 = por %p745_p2, %p744_p1 }
   0xa   :  { %p747_p4 = pnand %p746_p3, %p740_p0 }
   0xc   :  { %750 = shalt.err (!%p747_p4)
}
   0xd   :  { %s840_s24 = smov 128   ;;  %s841_s25 = smov 8  }
   0xe   :  { %37 = dma.hbm_to_vmem [thread:$0]  %s962_s1, 512, %s32_s22, [#allocation6], %s840_s24, %s840_s24, %s841_s25  }
   0xf   :  { %s842_s28 = smov [#allocation2]   ;;  %s843_s30 = smov [#allocation7]  }
  0x10   :  { %s22_s29 = sshll.u32 %s842_s28, 4  ;;  %s45_s7 = sshll.u32 %s843_s30, 4  ;;  %s23_s29 = int_to_ptr.vmem [resolvable:$true] %s22_s29  ;;  %s46_s7 = int_to_ptr.vmem [resolvable:$true] %s45_s7 }
  0x11   :  { %s759_s8 = scalar_lea.vmem %s23_s29, 128  ;;  %p764_p6 = scmp.lt.s32.totalorder %s23_s29, %s23_s29 }
  0x12   :  { %p760_p5 = scmp.ne.s32.totalorder %s23_s29, %s759_s8  ;;  %p765_p7 = scmp.lt.s32.totalorder %s759_s8, %s759_s8 }
  0x14   :  { %p766_p8 = por %p765_p7, %p764_p6 }
  0x16   :  { %p767_p9 = pnand %p766_p8, %p760_p5 }
  0x18   :  { %770 = shalt.err (!%p767_p9)
}
  0x19   :  { %25 = dma.hbm_to_vmem [thread:$0]  %s961_s0, 128, %s23_s29, [#allocation3]  }
  0x1a   :  { %s779_s11 = scalar_lea.vmem %s46_s7, 512  ;;  %p784_p11 = scmp.lt.s32.totalorder %s46_s7, %s46_s7 }
  0x1b   :  { %p780_p10 = scmp.ne.s32.totalorder %s46_s7, %s779_s11  ;;  %p785_p12 = scmp.lt.s32.totalorder %s779_s11, %s779_s11 }
  0x1d   :  { %p786_p13 = por %p785_p12, %p784_p11 }
  0x1f   :  { %p787_p0 = pnand %p786_p13, %p780_p10 }
  0x21   :  { %790 = shalt.err (!%p787_p0)
}
  0x22   :  { %51 = dma.hbm_to_vmem [thread:$0]  %s964_s3, 512, %s46_s7, [#allocation6], %s840_s24, %s840_s24, %s841_s25  }
  0x23   :  { %831 = dma.done.wait [#allocation3], 128  }
  0x24   :  { %832 = vsyncadd [#allocation3], 4294967168 }
  0x25   :  { %833 = dma.done.wait [#allocation6], 1024  }
  0x26   :  { %834 = vsyncadd [#allocation6], 4294966272  ;;  %v844_v0 = vmov 0.0   ;;  %vm845_vm0 = vmmov 0   ;;  %v153_v1 = vld [vmem:[#allocation7 + $0x18] sm:$0xff]  ;;  %v152_v3 = vld [vmem:[#allocation7 + $0x10] sm:$0xff] }
  0x27   :  { %672 = vmatprep.subr.mxu1 %v844_v0  ;;  %661 = vmatprep.subr.mxu0 %v844_v0  ;;  %v67_v2 = vld [vmem:[#allocation5 + $0x18] sm:$0xff]  ;;  %v66_v4 = vld [vmem:[#allocation5 + $0x10] sm:$0xff]  ;;  %v151_v5 = vld [vmem:[#allocation7 + $0x8] sm:$0xff]  ;;  %vm75_vm1 = vcmask 261120   ;;  %vm231_vm2 = vcmask 64512   ;;  %s846_s15 = smov 104  }
  0x28   :  { %680 = vmatprep.mubr.msk.f32.mxu1 %vm845_vm0, %v844_v0  ;;  %669 = vmatprep.mubr.msk.f32.mxu0 %vm845_vm0, %v844_v0  ;;  %v65_v6 = vld [vmem:[#allocation5 + $0x8] sm:$0xff]  ;;  %v150_v7 = vld [vmem:[#allocation7] sm:$0xff]  ;;  %v63_v9 = vld [vmem:[#allocation2] sm:$0xff]  ;;  %s847_s16 = smov 120   ;;  %s850_s18 = smov [#allocation9]  }
  0x29   :  { %673 = vmatpush3.msra.mxu1 %v153_v1  ;;  %662 = vmatpush3.msra.mxu0 %v67_v2  ;;  %v64_v8 = vld [vmem:[#allocation5] sm:$0xff]  ;;  %v633_v10 = vld [vmem:[%s965_s4] ss:$0 sm:$0xff]  ;;  %s848_s4 = smov 112   ;;  %s617_s19 = sshll.u32 %s850_s18, 4  ;;  %s618_s19 = int_to_ptr.vmem [resolvable:$true] %s617_s19 }
  0x2a   :  { %674 = vmatprep.subr.mxu1 %v844_v0  ;;  %663 = vmatprep.subr.mxu0 %v844_v0  ;;  %v631_v11 = vld [vmem:[%s963_s2] ss:$0 sm:$0xff]  ;;  %s849_s2 = smov [#allocation8]  }
  0x2b   :  { %675 = vmatpush3.msra.mxu1 %v152_v3  ;;  %664 = vmatpush3.msra.mxu0 %v66_v4  ;;  %s604_s17 = sshll.u32 %s849_s2, 4  ;;  %s605_s17 = int_to_ptr.vmem [resolvable:$true] %s604_s17 }
  0x2c   :  { %676 = vmatprep.subr.mxu1 %v844_v0  ;;  %665 = vmatprep.subr.mxu0 %v844_v0  ;;  %s791_s20 = scalar_lea.vmem %s605_s17, 512  ;;  %p796_p2 = scmp.lt.s32.totalorder %s605_s17, %s605_s17 }
  0x2d   :  { %677 = vmatpush3.msra.mxu1 %v151_v5  ;;  %666 = vmatpush3.msra.mxu0 %v65_v6  ;;  %p792_p1 = scmp.ne.s32.totalorder %s605_s17, %s791_s20  ;;  %p797_p3 = scmp.lt.s32.totalorder %s791_s20, %s791_s20 }
  0x2e   :  { %678 = vmatprep.subr.mxu1 %v844_v0  ;;  %667 = vmatprep.subr.mxu0 %v844_v0 }
  0x2f   :  { %679 = vmatpush3.msra.mxu1 %v150_v7  ;;  %668 = vmatpush3.msra.mxu0 %v64_v8  ;;  %p798_p4 = por %p797_p3, %p796_p2 }
  0x30   :  { %681 = vmatmul.mubr.msk.f32.vlgmr.msra.gmra.mxu1 %vm75_vm1, %v63_v9  ;;  %670 = vmatmul.mubr.msk.f32.vlgmr.msra.gmra.mxu0 %vm75_vm1, %v63_v9 }
  0x31   :  { %683 = vmatprep.subr.mxu0 %v844_v0  ;;  %685 = vmatprep.mubr.msk.f32.mxu0 %vm845_vm0, %v844_v0  ;;  %p799_p5 = pnand %p798_p4, %p792_p1 }
  0x32   :  { %688 = vmatprep.subr.mxu1 %v844_v0  ;;  %690 = vmatprep.mubr.msk.f32.mxu1 %vm845_vm0, %v844_v0 }
  0xf0   :  { %v227_v12 = vpop.f32.mrf.mxu1  ;;  %v145_v13 = vpop.f32.mrf.mxu0 }
  0xf1   :  { %v228_v14 = vadd.f32 %v633_v10, %v227_v12  ;;  %v146_v15 = vadd.f32 %v631_v11, %v145_v13 }
  0xf2   :  { %v682_v16 = vpop.f32.mrf.mxu1  ;;  %v671_v17 = vpop.f32.mrf.mxu0 }
  0xf3   :  { %v149_v18 = vmul.f32 0.35355338, %v146_v15  ;;  %507 = vrot.lane.b32.xlu1 %v228_v14, %s846_s15  ;;  %323 = vrot.lane.b32.xlu0 %v228_v14, %s847_s16 }
  0xf4   :  { %684 = vmatpush3.xpose.msk.msra.mxu0 %vm231_vm2, %v228_v14 }
  0xf5   :  { %693 = vmatprep.subr.mxu0 %v844_v0 }
  0xf7   :  { %686 = vmatmul.mubr.msk.f32.vlgmr.msra.gmra.mxu0 %vm231_vm2, %v149_v18  ;;  %415 = vrot.lane.b32.xlu0 %v228_v14, %s848_s4 }
  0xf8   :  { %321 = vrot.lane.b32.xlu1 %v149_v18, %s847_s16  ;;  %695 = vmatprep.mubr.msk.f32.mxu0 %vm845_vm0, %v844_v0 }
  0xfb   :  { %413 = vrot.lane.b32.xlu0 %v149_v18, %s848_s4 }
  0xfc   :  { %505 = vrot.lane.b32.xlu1 %v149_v18, %s846_s15 }
 0x165   :  { %v508_v19 = vpop.permute.xlu1 %507  ;;  %v324_v20 = vpop.permute.xlu0 %323 }
 0x166   :  { %689 = vmatpush3.xpose.msk.msra.mxu1 %vm231_vm2, %v324_v20 }
 0x167   :  { %698 = vmatprep.subr.mxu1 %v844_v0 }
 0x169   :  { %v416_v21 = vpop.permute.xlu0 %415 }
 0x16a   :  { %v322_v22 = vpop.permute.xlu1 %321  ;;  %694 = vmatpush3.xpose.msk.msra.mxu0 %vm231_vm2, %v416_v21 }
 0x16b   :  { %691 = vmatmul.mubr.msk.f32.vlgmr.msra.gmra.mxu1 %vm231_vm2, %v322_v22 }
 0x16c   :  { %699 = vmatpush3.xpose.msk.msra.mxu1 %vm231_vm2, %v508_v19  ;;  %700 = vmatprep.mubr.msk.f32.mxu1 %vm845_vm0, %v844_v0 }
 0x16d   :  { %v414_v23 = vpop.permute.xlu0 %413 }
 0x16e   :  { %v506_v24 = vpop.permute.xlu1 %505  ;;  %696 = vmatmul.mubr.msk.f32.vlgmr.msra.gmra.mxu0 %vm231_vm2, %v414_v23 }
 0x16f   :  { %701 = vmatmul.mubr.msk.f32.vlgmr.msra.gmra.mxu1 %vm231_vm2, %v506_v24 }
 0x1b7   :  { %v304_v25 = vpop.f32.mrf.mxu0 }
 0x1b8   :  { %v308_v26 = vsel %vm231_vm2, %v304_v25, -inf }
 0x1b9   :  { %309 = vmax.xlane.f32.xlu0 %v308_v26  ;;  %v687_v27 = vpop.f32.mrf.mxu0 }
 0x22b   :  { %v395_v28 = vpop.f32.mrf.mxu1 }
 0x22c   :  { %v399_v29 = vsel %vm231_vm2, %v395_v28, -inf }
 0x22d   :  { %400 = vmax.xlane.f32.xlu1 %v399_v29  ;;  %v692_v30 = vpop.f32.mrf.mxu1 }
 0x22e   :  { %v487_v31 = vpop.f32.mrf.mxu0 }
 0x22f   :  { %v579_v32 = vpop.f32.mrf.mxu1  ;;  %v491_v33 = vsel %vm231_vm2, %v487_v31, -inf }
 0x230   :  { %492 = vmax.xlane.f32.xlu0 %v491_v33  ;;  %v697_v34 = vpop.f32.mrf.mxu0  ;;  %v583_v36 = vsel %vm231_vm2, %v579_v32, -inf }
 0x231   :  { %v702_v35 = vpop.f32.mrf.mxu1 }
 0x234   :  { %584 = vmax.xlane.f32.xlu0 %v583_v36 }
 0x242   :  { %v310_v37 = vpop.xlane.xlu0 %309 }
 0x243   :  { %v311_v38 = vsub.f32 %v304_v25, %v310_v37 }
 0x245   :  { %v312_v39 = vmul.f32 1.442695, %v311_v38 }
 0x247   :  { %715 = vpow2.f32 %v312_v39 }
 0x254   :  { %v716_v40 = vpop.eup %715 }
 0x255   :  { %v314_v41 = vsel %vm231_vm2, %v716_v40, 0.0 }
 0x256   :  { %315 = vadd.xlane.f32.xlu1 %v314_v41 }
 0x2b6   :  { %v401_v42 = vpop.xlane.xlu1 %400 }
 0x2b7   :  { %v402_v43 = vsub.f32 %v395_v28, %v401_v42 }
 0x2b9   :  { %v403_v44 = vmul.f32 1.442695, %v402_v43  ;;  %v493_v45 = vpop.xlane.xlu0 %492 }
 0x2ba   :  { %v494_v46 = vsub.f32 %v487_v31, %v493_v45 }
 0x2bb   :  { %717 = vpow2.f32 %v403_v44 }
 0x2bc   :  { %v495_v47 = vmul.f32 1.442695, %v494_v46 }
 0x2bd   :  { %v585_v48 = vpop.xlane.xlu0 %584 }
 0x2be   :  { %719 = vpow2.f32 %v495_v47  ;;  %v586_v49 = vsub.f32 %v579_v32, %v585_v48 }
 0x2c0   :  { %v587_v50 = vmul.f32 1.442695, %v586_v49 }
 0x2c2   :  { %721 = vpow2.f32 %v587_v50 }
 0x2c8   :  { %v718_v51 = vpop.eup %717 }
 0x2c9   :  { %v405_v52 = vsel %vm231_vm2, %v718_v51, 0.0 }
 0x2ca   :  { %406 = vadd.xlane.f32.xlu0 %v405_v52 }
 0x2cb   :  { %v720_v53 = vpop.eup %719 }
 0x2cc   :  { %v497_v54 = vsel %vm231_vm2, %v720_v53, 0.0 }
 0x2cd   :  { %498 = vadd.xlane.f32.xlu1 %v497_v54 }
 0x2cf   :  { %v722_v55 = vpop.eup %721 }
 0x2d0   :  { %v589_v56 = vsel %vm231_vm2, %v722_v55, 0.0 }
 0x2d1   :  { %590 = vadd.xlane.f32.xlu0 %v589_v56 }
 0x2df   :  { %v316_v57 = vpop.xlane.xlu1 %315 }
 0x2e0   :  { %723 = vrcp.f32 %v316_v57 }
 0x2ed   :  { %v724_v58 = vpop.eup %723 }
 0x2ee   :  { %v318_v59 = vmul.f32 %v724_v58, %v716_v40 }
 0x2f0   :  { %319 = vst.msk [vmem:[#allocation8] sm:$0xff] %vm231_vm2, %v318_v59 }
 0x353   :  { %v407_v60 = vpop.xlane.xlu0 %406 }
 0x354   :  { %725 = vrcp.f32 %v407_v60 }
 0x356   :  { %v499_v61 = vpop.xlane.xlu1 %498 }
 0x357   :  { %727 = vrcp.f32 %v499_v61 }
 0x35a   :  { %v591_v62 = vpop.xlane.xlu0 %590 }
 0x35b   :  { %729 = vrcp.f32 %v591_v62 }
 0x361   :  { %v726_v63 = vpop.eup %725 }
 0x362   :  { %v409_v0 = vmul.f32 %v726_v63, %v718_v51 }
 0x364   :  { %v728_v1 = vpop.eup %727  ;;  %411 = vst.msk [vmem:[#allocation8 + $0x8] sm:$0xff] %vm231_vm2, %v409_v0  ;;  %v412_v3 = vadd.f32 %v409_v0, %v318_v59 }
 0x365   :  { %v501_v2 = vmul.f32 %v728_v1, %v720_v53 }
 0x367   :  { %503 = vst.msk [vmem:[#allocation8 + $0x10] sm:$0xff] %vm231_vm2, %v501_v2  ;;  %v504_v6 = vadd.f32 %v501_v2, %v412_v3 }
 0x368   :  { %v730_v4 = vpop.eup %729 }
 0x369   :  { %v593_v5 = vmul.f32 %v730_v4, %v722_v55 }
 0x36b   :  { %595 = vst.msk [vmem:[#allocation8 + $0x18] sm:$0xff] %vm231_vm2, %v593_v5  ;;  %v596_v7 = vadd.f32 %v593_v5, %v504_v6 }
 0x36c   :  { %802 = shalt.err (!%p799_p5)
}
 0x36d   :  { %610 = dma.vmem_to_hbm [thread:$0]  %s605_s17, 512, %s966_s5, [#allocation4], %s840_s24, %s840_s24, %s841_s25   ;;  %v597_v8 = vmul.f32 0.25, %v596_v7 }
 0x36e   :  { %s811_s23 = scalar_lea.vmem %s618_s19, 128  ;;  %p816_p7 = scmp.lt.s32.totalorder %s618_s19, %s618_s19 }
 0x36f   :  { %598 = vst.msk [vmem:[#allocation9] sm:$0xff] %vm231_vm2, %v597_v8  ;;  %p812_p6 = scmp.ne.s32.totalorder %s618_s19, %s811_s23  ;;  %p817_p8 = scmp.lt.s32.totalorder %s811_s23, %s811_s23 }
 0x371   :  { %p818_p9 = por %p817_p8, %p816_p7 }
 0x373   :  { %p819_p10 = pnand %p818_p9, %p812_p6 }
 0x375   :  { %822 = shalt.err (!%p819_p10)
}
 0x376   :  { %620 = dma.vmem_to_hbm [thread:$0]  %s618_s19, 128, %s967_s6, [#allocation10]  }
 0x377   :  { %835 = dma.done.wait [#allocation4], 512  }
 0x378   :  { %836 = vsyncadd [#allocation4], 4294966784 }
 0x379   :  { %837 = dma.done.wait [#allocation10], 128  }
 0x37a   :  { %838 = vsyncadd [#allocation10], 4294967168 }
 0x37b   :  { %627 = vsyncpa [#allocation3], 1 }
 0x37c   :  { %628 = vsyncpa [#allocation6], 1 }
 0x37d   :  { %629 = vsyncpa [#allocation4], 1 }
 0x37e   :  { %630 = vsyncpa [#allocation10], 1 }

</bundles_post_ra>
